<compile_context>
chip_gen: v7x
topology: tpu7x:2x2x1
jax: 0.10.0
libtpu: 0.0.40
codegen_flags: <defaults>
</compile_context>

<pallas_src>
import jax
import jax.numpy as jnp
from jax.experimental import pallas as pl
from jax.experimental.pallas import tpu as pltpu

KERNEL = 3
STRIDE = 3  # nn.MaxPool2d default: stride == kernel_size


def _maxpool_kernel(x_ref, o_ref):
    # x_ref block: (1, 3*THo, Wo, 3*C)   (W taps pre-folded into lanes)
    # o_ref block: (1,   THo, Wo,   C)
    tho = o_ref.shape[1]
    C = o_ref.shape[3]
    for r in range(tho):  # small static unroll, THo <= 8
        # Vertical max: three contiguous full-row loads (no strided sublane reads).
        r0 = x_ref[0, 3 * r + 0]
        r1 = x_ref[0, 3 * r + 1]
        r2 = x_ref[0, 3 * r + 2]
        vmax = jnp.maximum(jnp.maximum(r0, r1), r2)  # (Wo, 3*C)
        # Horizontal max: three contiguous lane slices (kernel taps live on lanes).
        hmax = jnp.maximum(
            jnp.maximum(vmax[:, 0:C], vmax[:, C:2 * C]), vmax[:, 2 * C:3 * C]
        )  # (Wo, C)
        o_ref[0, r] = hmax


def _pick_row_tile(Ho, Wo, C, itemsize, budget_bytes=2 * 1024 * 1024, max_unroll=8):
    """Largest divisor of Ho (<= max_unroll) whose input tile fits a small VMEM budget."""
    best = 1
    for t in range(1, min(Ho, max_unroll) + 1):
        in_tile_bytes = 3 * t * Wo * 3 * C * itemsize
        if Ho % t == 0 and in_tile_bytes <= budget_bytes:
            best = t
    return best


def maxpool2d_nhwc(x_nhwc):
    """MaxPool2d(kernel_size=3, stride=3, padding=0, ceil_mode=False) on NHWC input."""
    N, H, W, C = x_nhwc.shape
    if H < KERNEL or W < KERNEL:
        raise ValueError("Input spatial dims must be >= kernel_size (3).")
    Ho = (H - KERNEL) // STRIDE + 1
    Wo = (W - KERNEL) // STRIDE + 1
    itemsize = jnp.dtype(x_nhwc.dtype).itemsize

    # Layout plumbing: group W into (Wo, 3) and merge the 3 taps with C.
    # In row-major NHWC this is a pure reshape (plus a cheap crop if W % 3 != 0).
    x_g = x_nhwc[:, :, : Wo * STRIDE, :].reshape(N, H, Wo, STRIDE * C)

    THo = _pick_row_tile(Ho, Wo, C, itemsize)
    grid = (N, Ho // THo)

    out = pl.pallas_call(
        _maxpool_kernel,
        out_shape=jax.ShapeDtypeStruct((N, Ho, Wo, C), x_nhwc.dtype),
        grid_spec=pltpu.PrefetchScalarGridSpec(
            num_scalar_prefetch=0,
            grid=grid,
            in_specs=[
                pl.BlockSpec(
                    (1, STRIDE * THo, Wo, STRIDE * C),
                    lambda n, i: (n, i, 0, 0),
                )
            ],
            out_specs=pl.BlockSpec((1, THo, Wo, C), lambda n, i: (n, i, 0, 0)),
        ),
        compiler_params=pltpu.CompilerParams(
            dimension_semantics=("parallel", "parallel"),
            vmem_limit_bytes=32 * 1024 * 1024,  # safe on v5e/v6e/v7x
        ),
        cost_estimate=pl.CostEstimate(
            flops=8 * N * Ho * Wo * C,
            transcendentals=0,
            bytes_accessed=(N * H * W * C + N * Ho * Wo * C) * itemsize,
        ),
    )(x_g)
    return out


def maxpool2d_nchw(x):
    """NCHW wrapper matching the PyTorch module's I/O contract.

    The two transposes are layout glue for the NCHW contract only; an NHWC
    end-to-end pipeline should call maxpool2d_nhwc and skip them entirely.
    """
    x_nhwc = jnp.transpose(x, (0, 2, 3, 1))        # NCHW -> NHWC
    out_nhwc = maxpool2d_nhwc(x_nhwc)
    return jnp.transpose(out_nhwc, (0, 3, 1, 2))   # NHWC -> NCHW


def _reference_maxpool_nchw(x):
    # Pure-JAX reference (reduce_window) for correctness checking.
    return jax.lax.reduce_window(
        x,
        jnp.array(-jnp.inf, dtype=x.dtype),
        jax.lax.max,
        window_dimensions=(1, 1, KERNEL, KERNEL),
        window_strides=(1, 1, STRIDE, STRIDE),
        padding="VALID",
    )


if __name__ == "__main__":
    key = jax.random.PRNGKey(0)
    x = jax.random.normal(key, (2, 4, 16, 16), dtype=jnp.float32)  # NCHW

    y = maxpool2d_nchw(x)
    y = jax.block_until_ready(y)

    assert y.shape == (2, 4, 5, 5), y.shape
    y_ref = _reference_maxpool_nchw(x)
    assert jnp.allclose(y, y_ref), "Pallas maxpool does not match reference"

    print("KERNEL_OK")
</pallas_src>

<mosaic_0001>
module attributes {stable_mosaic.version = 11 : i64} {
  func.func @_maxpool_kernel(%arg0: i32, %arg1: i32, %arg2: memref<1x15x5x12xf32, #tpu.memory_space<vmem>>, %arg3: memref<1x5x5x4xf32, #tpu.memory_space<vmem>>) attributes {dimension_semantics = [#tpu.dimension_semantics<parallel>, #tpu.dimension_semantics<parallel>], iteration_bounds = array<i64: 2, 1>, scalar_prefetch = 0 : i64, scratch_operands = 0 : i64, tpu.core_type = #tpu.core_type<tc>, window_params = [{transform_indices = @transform_0, window_bounds = array<i64: 1, 15, 5, 12>}, {transform_indices = @transform_1, window_bounds = array<i64: 1, 5, 5, 4>}]} {
    %c0 = arith.constant 0 : index
    %c0_0 = arith.constant 0 : index
    %c0_1 = arith.constant 0 : index
    %c0_2 = arith.constant 0 : index
    %0 = vector.load %arg2[%c0, %c0_0, %c0_1, %c0_2] : memref<1x15x5x12xf32, #tpu.memory_space<vmem>>, vector<1x1x5x12xf32>
    %1 = vector.shape_cast %0 : vector<1x1x5x12xf32> to vector<5x12xf32>
    %c0_3 = arith.constant 0 : index
    %c1 = arith.constant 1 : index
    %c0_4 = arith.constant 0 : index
    %c0_5 = arith.constant 0 : index
    %2 = vector.load %arg2[%c0_3, %c1, %c0_4, %c0_5] : memref<1x15x5x12xf32, #tpu.memory_space<vmem>>, vector<1x1x5x12xf32>
    %3 = vector.shape_cast %2 : vector<1x1x5x12xf32> to vector<5x12xf32>
    %c0_6 = arith.constant 0 : index
    %c2 = arith.constant 2 : index
    %c0_7 = arith.constant 0 : index
    %c0_8 = arith.constant 0 : index
    %4 = vector.load %arg2[%c0_6, %c2, %c0_7, %c0_8] : memref<1x15x5x12xf32, #tpu.memory_space<vmem>>, vector<1x1x5x12xf32>
    %5 = vector.shape_cast %4 : vector<1x1x5x12xf32> to vector<5x12xf32>
    %6 = arith.maximumf %1, %3 : vector<5x12xf32>
    %7 = arith.maximumf %6, %5 : vector<5x12xf32>
    %8 = vector.extract_strided_slice %7 {offsets = [0, 0], sizes = [5, 4], strides = [1, 1]} : vector<5x12xf32> to vector<5x4xf32>
    %9 = vector.extract_strided_slice %7 {offsets = [0, 4], sizes = [5, 4], strides = [1, 1]} : vector<5x12xf32> to vector<5x4xf32>
    %10 = arith.maximumf %8, %9 : vector<5x4xf32>
    %11 = vector.extract_strided_slice %7 {offsets = [0, 8], sizes = [5, 4], strides = [1, 1]} : vector<5x12xf32> to vector<5x4xf32>
    %12 = arith.maximumf %10, %11 : vector<5x4xf32>
    %c0_9 = arith.constant 0 : index
    %c0_10 = arith.constant 0 : index
    %c0_11 = arith.constant 0 : index
    %c0_12 = arith.constant 0 : index
    %13 = vector.load %arg3[%c0_9, %c0_10, %c0_11, %c0_12] : memref<1x5x5x4xf32, #tpu.memory_space<vmem>>, vector<1x1x5x4xf32>
    %14 = vector.shape_cast %13 : vector<1x1x5x4xf32> to vector<5x4xf32>
    %15 = vector.shape_cast %12 : vector<5x4xf32> to vector<1x1x5x4xf32>
    tpu.vector_store %arg3[%c0_9, %c0_10, %c0_11, %c0_12], %15 {strides = array<i32>} : memref<1x5x5x4xf32, #tpu.memory_space<vmem>>, vector<1x1x5x4xf32>,
    %c0_13 = arith.constant 0 : index
    %c3 = arith.constant 3 : index
    %c0_14 = arith.constant 0 : index
    %c0_15 = arith.constant 0 : index
    %16 = vector.load %arg2[%c0_13, %c3, %c0_14, %c0_15] : memref<1x15x5x12xf32, #tpu.memory_space<vmem>>, vector<1x1x5x12xf32>
    %17 = vector.shape_cast %16 : vector<1x1x5x12xf32> to vector<5x12xf32>
    %c0_16 = arith.constant 0 : index
    %c4 = arith.constant 4 : index
    %c0_17 = arith.constant 0 : index
    %c0_18 = arith.constant 0 : index
    %18 = vector.load %arg2[%c0_16, %c4, %c0_17, %c0_18] : memref<1x15x5x12xf32, #tpu.memory_space<vmem>>, vector<1x1x5x12xf32>
    %19 = vector.shape_cast %18 : vector<1x1x5x12xf32> to vector<5x12xf32>
    %c0_19 = arith.constant 0 : index
    %c5 = arith.constant 5 : index
    %c0_20 = arith.constant 0 : index
    %c0_21 = arith.constant 0 : index
    %20 = vector.load %arg2[%c0_19, %c5, %c0_20, %c0_21] : memref<1x15x5x12xf32, #tpu.memory_space<vmem>>, vector<1x1x5x12xf32>
    %21 = vector.shape_cast %20 : vector<1x1x5x12xf32> to vector<5x12xf32>
    %22 = arith.maximumf %17, %19 : vector<5x12xf32>
    %23 = arith.maximumf %22, %21 : vector<5x12xf32>
    %24 = vector.extract_strided_slice %23 {offsets = [0, 0], sizes = [5, 4], strides = [1, 1]} : vector<5x12xf32> to vector<5x4xf32>
    %25 = vector.extract_strided_slice %23 {offsets = [0, 4], sizes = [5, 4], strides = [1, 1]} : vector<5x12xf32> to vector<5x4xf32>
    %26 = arith.maximumf %24, %25 : vector<5x4xf32>
    %27 = vector.extract_strided_slice %23 {offsets = [0, 8], sizes = [5, 4], strides = [1, 1]} : vector<5x12xf32> to vector<5x4xf32>
    %28 = arith.maximumf %26, %27 : vector<5x4xf32>
    %c0_22 = arith.constant 0 : index
    %c1_23 = arith.constant 1 : index
    %c0_24 = arith.constant 0 : index
    %c0_25 = arith.constant 0 : index
    %29 = vector.load %arg3[%c0_22, %c1_23, %c0_24, %c0_25] : memref<1x5x5x4xf32, #tpu.memory_space<vmem>>, vector<1x1x5x4xf32>
    %30 = vector.shape_cast %29 : vector<1x1x5x4xf32> to vector<5x4xf32>
    %31 = vector.shape_cast %28 : vector<5x4xf32> to vector<1x1x5x4xf32>
    tpu.vector_store %arg3[%c0_22, %c1_23, %c0_24, %c0_25], %31 {strides = array<i32>} : memref<1x5x5x4xf32, #tpu.memory_space<vmem>>, vector<1x1x5x4xf32>,
    %c0_26 = arith.constant 0 : index
    %c6 = arith.constant 6 : index
    %c0_27 = arith.constant 0 : index
    %c0_28 = arith.constant 0 : index
    %32 = vector.load %arg2[%c0_26, %c6, %c0_27, %c0_28] : memref<1x15x5x12xf32, #tpu.memory_space<vmem>>, vector<1x1x5x12xf32>
    %33 = vector.shape_cast %32 : vector<1x1x5x12xf32> to vector<5x12xf32>
    %c0_29 = arith.constant 0 : index
    %c7 = arith.constant 7 : index
    %c0_30 = arith.constant 0 : index
    %c0_31 = arith.constant 0 : index
    %34 = vector.load %arg2[%c0_29, %c7, %c0_30, %c0_31] : memref<1x15x5x12xf32, #tpu.memory_space<vmem>>, vector<1x1x5x12xf32>
    %35 = vector.shape_cast %34 : vector<1x1x5x12xf32> to vector<5x12xf32>
    %c0_32 = arith.constant 0 : index
    %c8 = arith.constant 8 : index
    %c0_33 = arith.constant 0 : index
    %c0_34 = arith.constant 0 : index
    %36 = vector.load %arg2[%c0_32, %c8, %c0_33, %c0_34] : memref<1x15x5x12xf32, #tpu.memory_space<vmem>>, vector<1x1x5x12xf32>
    %37 = vector.shape_cast %36 : vector<1x1x5x12xf32> to vector<5x12xf32>
    %38 = arith.maximumf %33, %35 : vector<5x12xf32>
    %39 = arith.maximumf %38, %37 : vector<5x12xf32>
    %40 = vector.extract_strided_slice %39 {offsets = [0, 0], sizes = [5, 4], strides = [1, 1]} : vector<5x12xf32> to vector<5x4xf32>
    %41 = vector.extract_strided_slice %39 {offsets = [0, 4], sizes = [5, 4], strides = [1, 1]} : vector<5x12xf32> to vector<5x4xf32>
    %42 = arith.maximumf %40, %41 : vector<5x4xf32>
    %43 = vector.extract_strided_slice %39 {offsets = [0, 8], sizes = [5, 4], strides = [1, 1]} : vector<5x12xf32> to vector<5x4xf32>
    %44 = arith.maximumf %42, %43 : vector<5x4xf32>
    %c0_35 = arith.constant 0 : index
    %c2_36 = arith.constant 2 : index
    %c0_37 = arith.constant 0 : index
    %c0_38 = arith.constant 0 : index
    %45 = vector.load %arg3[%c0_35, %c2_36, %c0_37, %c0_38] : memref<1x5x5x4xf32, #tpu.memory_space<vmem>>, vector<1x1x5x4xf32>
    %46 = vector.shape_cast %45 : vector<1x1x5x4xf32> to vector<5x4xf32>
    %47 = vector.shape_cast %44 : vector<5x4xf32> to vector<1x1x5x4xf32>
    tpu.vector_store %arg3[%c0_35, %c2_36, %c0_37, %c0_38], %47 {strides = array<i32>} : memref<1x5x5x4xf32, #tpu.memory_space<vmem>>, vector<1x1x5x4xf32>,
    %c0_39 = arith.constant 0 : index
    %c9 = arith.constant 9 : index
    %c0_40 = arith.constant 0 : index
    %c0_41 = arith.constant 0 : index
    %48 = vector.load %arg2[%c0_39, %c9, %c0_40, %c0_41] : memref<1x15x5x12xf32, #tpu.memory_space<vmem>>, vector<1x1x5x12xf32>
    %49 = vector.shape_cast %48 : vector<1x1x5x12xf32> to vector<5x12xf32>
    %c0_42 = arith.constant 0 : index
    %c10 = arith.constant 10 : index
    %c0_43 = arith.constant 0 : index
    %c0_44 = arith.constant 0 : index
    %50 = vector.load %arg2[%c0_42, %c10, %c0_43, %c0_44] : memref<1x15x5x12xf32, #tpu.memory_space<vmem>>, vector<1x1x5x12xf32>
    %51 = vector.shape_cast %50 : vector<1x1x5x12xf32> to vector<5x12xf32>
    %c0_45 = arith.constant 0 : index
    %c11 = arith.constant 11 : index
    %c0_46 = arith.constant 0 : index
    %c0_47 = arith.constant 0 : index
    %52 = vector.load %arg2[%c0_45, %c11, %c0_46, %c0_47] : memref<1x15x5x12xf32, #tpu.memory_space<vmem>>, vector<1x1x5x12xf32>
    %53 = vector.shape_cast %52 : vector<1x1x5x12xf32> to vector<5x12xf32>
    %54 = arith.maximumf %49, %51 : vector<5x12xf32>
    %55 = arith.maximumf %54, %53 : vector<5x12xf32>
    %56 = vector.extract_strided_slice %55 {offsets = [0, 0], sizes = [5, 4], strides = [1, 1]} : vector<5x12xf32> to vector<5x4xf32>
    %57 = vector.extract_strided_slice %55 {offsets = [0, 4], sizes = [5, 4], strides = [1, 1]} : vector<5x12xf32> to vector<5x4xf32>
    %58 = arith.maximumf %56, %57 : vector<5x4xf32>
    %59 = vector.extract_strided_slice %55 {offsets = [0, 8], sizes = [5, 4], strides = [1, 1]} : vector<5x12xf32> to vector<5x4xf32>
    %60 = arith.maximumf %58, %59 : vector<5x4xf32>
    %c0_48 = arith.constant 0 : index
    %c3_49 = arith.constant 3 : index
    %c0_50 = arith.constant 0 : index
    %c0_51 = arith.constant 0 : index
    %61 = vector.load %arg3[%c0_48, %c3_49, %c0_50, %c0_51] : memref<1x5x5x4xf32, #tpu.memory_space<vmem>>, vector<1x1x5x4xf32>
    %62 = vector.shape_cast %61 : vector<1x1x5x4xf32> to vector<5x4xf32>
    %63 = vector.shape_cast %60 : vector<5x4xf32> to vector<1x1x5x4xf32>
    tpu.vector_store %arg3[%c0_48, %c3_49, %c0_50, %c0_51], %63 {strides = array<i32>} : memref<1x5x5x4xf32, #tpu.memory_space<vmem>>, vector<1x1x5x4xf32>,
    %c0_52 = arith.constant 0 : index
    %c12 = arith.constant 12 : index
    %c0_53 = arith.constant 0 : index
    %c0_54 = arith.constant 0 : index
    %64 = vector.load %arg2[%c0_52, %c12, %c0_53, %c0_54] : memref<1x15x5x12xf32, #tpu.memory_space<vmem>>, vector<1x1x5x12xf32>
    %65 = vector.shape_cast %64 : vector<1x1x5x12xf32> to vector<5x12xf32>
    %c0_55 = arith.constant 0 : index
    %c13 = arith.constant 13 : index
    %c0_56 = arith.constant 0 : index
    %c0_57 = arith.constant 0 : index
    %66 = vector.load %arg2[%c0_55, %c13, %c0_56, %c0_57] : memref<1x15x5x12xf32, #tpu.memory_space<vmem>>, vector<1x1x5x12xf32>
    %67 = vector.shape_cast %66 : vector<1x1x5x12xf32> to vector<5x12xf32>
    %c0_58 = arith.constant 0 : index
    %c14 = arith.constant 14 : index
    %c0_59 = arith.constant 0 : index
    %c0_60 = arith.constant 0 : index
    %68 = vector.load %arg2[%c0_58, %c14, %c0_59, %c0_60] : memref<1x15x5x12xf32, #tpu.memory_space<vmem>>, vector<1x1x5x12xf32>
    %69 = vector.shape_cast %68 : vector<1x1x5x12xf32> to vector<5x12xf32>
    %70 = arith.maximumf %65, %67 : vector<5x12xf32>
    %71 = arith.maximumf %70, %69 : vector<5x12xf32>
    %72 = vector.extract_strided_slice %71 {offsets = [0, 0], sizes = [5, 4], strides = [1, 1]} : vector<5x12xf32> to vector<5x4xf32>
    %73 = vector.extract_strided_slice %71 {offsets = [0, 4], sizes = [5, 4], strides = [1, 1]} : vector<5x12xf32> to vector<5x4xf32>
    %74 = arith.maximumf %72, %73 : vector<5x4xf32>
    %75 = vector.extract_strided_slice %71 {offsets = [0, 8], sizes = [5, 4], strides = [1, 1]} : vector<5x12xf32> to vector<5x4xf32>
    %76 = arith.maximumf %74, %75 : vector<5x4xf32>
    %c0_61 = arith.constant 0 : index
    %c4_62 = arith.constant 4 : index
    %c0_63 = arith.constant 0 : index
    %c0_64 = arith.constant 0 : index
    %77 = vector.load %arg3[%c0_61, %c4_62, %c0_63, %c0_64] : memref<1x5x5x4xf32, #tpu.memory_space<vmem>>, vector<1x1x5x4xf32>
    %78 = vector.shape_cast %77 : vector<1x1x5x4xf32> to vector<5x4xf32>
    %79 = vector.shape_cast %76 : vector<5x4xf32> to vector<1x1x5x4xf32>
    tpu.vector_store %arg3[%c0_61, %c4_62, %c0_63, %c0_64], %79 {strides = array<i32>} : memref<1x5x5x4xf32, #tpu.memory_space<vmem>>, vector<1x1x5x4xf32>,
    return
  }
  func.func @transform_0(%arg0: i32, %arg1: i32) -> (i32, i32, i32, i32) {
    %c0_i32 = arith.constant 0 : i32
    %c0_i32_0 = arith.constant 0 : i32
    %c0_i32_1 = arith.constant 0 : i32
    return %arg0, %arg1, %c0_i32, %c0_i32_0 : i32, i32, i32, i32
  }
  func.func @transform_1(%arg0: i32, %arg1: i32) -> (i32, i32, i32, i32) {
    %c0_i32 = arith.constant 0 : i32
    %c0_i32_0 = arith.constant 0 : i32
    %c0_i32_1 = arith.constant 0 : i32
    return %arg0, %arg1, %c0_i32, %c0_i32_0 : i32, i32, i32, i32
  }
}

</mosaic_0001>

<bundles_post_ra>
// kernel: tpu_custom_call.1
= control target key start
LH: loop header
LB: loop body
LE: loop exit
PB: predicated region body
PF: predicated region fallthrough
CT: control target
= control target key end

     0   :  { %s449_s6 = smov 0   ;;  %s451_s7 = smov 0   ;;  %s491_s0 = inlined_call_operand.vmem [shape: f32[2,16,5,12], index: 0, kind: input, shape index: {}]   ;;  %s492_s1 = inlined_call_operand.vmem [shape: f32[2,5,5,4], index: 1, kind: output, shape index: {}]  }
   0x1   :  { %s453_s8 = smov 0  }
   0x2 LB: > { %s23_s9 = sadd.s32 1, %s431_s7  ;;  %p361_p0 = scmp.ge.s32.totalorder %s435_s8, 1  ;;  %s435_s8 = sphi %s453_s8, %s11_s8   ;;  %s431_s7 = sphi %s451_s7, %s494_s7   ;;  %s427_s6 = sphi %s449_s6, %s493_s6  }
   0x3   : > { %p25_p1 = scmp.ge.s32.totalorder %s23_s9, 2  ;;  %p116_p2 = scmp.lt.s32.totalorder %s435_s8, 3 }
   0x5   : > { %s496_s9 = smov (%p25_p1, %s23_s9), 0  ;;  %p117_p3 = pnand %p361_p0, %p116_p2 }
   0x6   : > { %p153_p4 = scmp.lt.s32.totalorder (!%p117_p3), %s427_s6, 1  ;;  %s437_s14 = smov (!%p117_p3), 124   ;;  %vm192_vm0 = vcmask (!%p117_p3), 28672  }
   0x7   : > { %120 = sbr.rel (%p117_p3) target bundleno = 157 (0x9d), region = 24  ;;  %s438_s15 = smov (!%p117_p3), 120  }
   0xe   : > { %s498_s6 = smov (!%p153_p4, %s427_s6), 1 }
   0xf   : > { %s385_s10 = sshll.u32 %s498_s6, 7  ;;  %s386_s16 = smul.u32 40, %s498_s6 }
  0x10   : > { %s160_s13 = scalar_lea.vmem %s491_s0, %s385_s10 }
  0x11   : > { %v371_v0 = vld [vmem:[%s160_s13 + $0x30] sm:$0x1f]  ;;  %v372_v1 = vld [vmem:[%s160_s13 + $0x38] sm:$0x1f]  ;;  %v373_v2 = vld [vmem:[%s160_s13 + $0x40] sm:$0x1f]  ;;  %s174_s19 = scalar_lea.vmem %s492_s1, %s386_s16 }
  0x12   : > { %v219_v3 = vmax.f32 %v371_v0, %v372_v1  ;;  %v176_v4 = vld [vmem:[%s160_s13] sm:$0x1f]  ;;  %v365_v5 = vld [vmem:[%s160_s13 + $0x8] sm:$0x1f]  ;;  %v366_v6 = vld [vmem:[%s160_s13 + $0x10] sm:$0x1f] }
  0x13   : > { %v181_v7 = vmax.f32 %v176_v4, %v365_v5  ;;  %v375_v8 = vld [vmem:[%s160_s13 + $0x48] sm:$0x1f]  ;;  %v376_v9 = vld [vmem:[%s160_s13 + $0x50] sm:$0x1f]  ;;  %v377_v10 = vld [vmem:[%s160_s13 + $0x58] sm:$0x1f] }
  0x14   : > { %v220_v11 = vmax.f32 %v219_v3, %v373_v2  ;;  %v238_v12 = vmax.f32 %v375_v8, %v376_v9  ;;  %v367_v13 = vld [vmem:[%s160_s13 + $0x18] sm:$0x1f]  ;;  %v368_v14 = vld [vmem:[%s160_s13 + $0x20] sm:$0x1f]  ;;  %v369_v15 = vld [vmem:[%s160_s13 + $0x28] sm:$0x1f] }
  0x15   : > { %v182_v16 = vmax.f32 %v181_v7, %v366_v6  ;;  %v200_v17 = vmax.f32 %v367_v13, %v368_v14  ;;  %v379_v18 = vld [vmem:[%s160_s13 + $0x60] sm:$0x1f]  ;;  %v380_v19 = vld [vmem:[%s160_s13 + $0x68] sm:$0x1f]  ;;  %v381_v23 = vld [vmem:[%s160_s13 + $0x70] sm:$0x1f] }
  0x16   : > { %222 = vrot.lane.b32.xlu1 %v220_v11, %s437_s14  ;;  %v239_v20 = vmax.f32 %v238_v12, %v377_v10  ;;  %v257_v22 = vmax.f32 %v379_v18, %v380_v19 }
  0x17   : > { %184 = vrot.lane.b32.xlu0 %v182_v16, %s437_s14  ;;  %v201_v21 = vmax.f32 %v200_v17, %v369_v15 }
  0x18   : > { %v258_v24 = vmax.f32 %v257_v22, %v381_v23 }
  0x1a   : > { %241 = vrot.lane.b32.xlu1 %v239_v20, %s437_s14 }
  0x1b   : > { %203 = vrot.lane.b32.xlu0 %v201_v21, %s437_s14 }
  0x1e   : > { %188 = vrot.lane.b32.xlu1 %v182_v16, %s438_s15 }
  0x1f   : > { %260 = vrot.lane.b32.xlu0 %v258_v24, %s437_s14 }
  0x22   : > { %226 = vrot.lane.b32.xlu1 %v220_v11, %s438_s15 }
  0x23   : > { %207 = vrot.lane.b32.xlu0 %v201_v21, %s438_s15 }
  0x26   : > { %264 = vrot.lane.b32.xlu1 %v258_v24, %s438_s15 }
  0x27   : > { %245 = vrot.lane.b32.xlu0 %v239_v20, %s438_s15 }
  0x88   : > { %v223_v25 = vpop.permute.xlu1 %222 }
  0x89   : > { %v185_v26 = vpop.permute.xlu0 %184  ;;  %v225_v33 = vmax.f32 %v220_v11, %v223_v25 }
  0x8a   : > { %v187_v29 = vmax.f32 %v182_v16, %v185_v26 }
  0x8c   : > { %v242_v27 = vpop.permute.xlu1 %241 }
  0x8d   : > { %v204_v28 = vpop.permute.xlu0 %203  ;;  %v244_v40 = vmax.f32 %v239_v20, %v242_v27 }
  0x8e   : > { %v206_v34 = vmax.f32 %v201_v21, %v204_v28 }
  0x90   : > { %v189_v30 = vpop.permute.xlu1 %188 }
  0x91   : > { %v191_v31 = vmax.f32 %v187_v29, %v189_v30  ;;  %v261_v32 = vpop.permute.xlu0 %260 }
  0x92   : > { %v263_v39 = vmax.f32 %v258_v24, %v261_v32 }
  0x93   : > { %193 = vst.msk [vmem:[%s174_s19] sm:$0x1f] %vm192_vm0, %v191_v31 }
  0x94   : > { %v227_v35 = vpop.permute.xlu1 %226 }
  0x95   : > { %v229_v36 = vmax.f32 %v225_v33, %v227_v35  ;;  %v208_v37 = vpop.permute.xlu0 %207 }
  0x96   : > { %v210_v38 = vmax.f32 %v206_v34, %v208_v37 }
  0x97   : > { %374 = vst.msk [vmem:[%s174_s19 + $0x10] sm:$0x1f] %vm192_vm0, %v229_v36 }
  0x98   : > { %370 = vst.msk [vmem:[%s174_s19 + $0x8] sm:$0x1f] %vm192_vm0, %v210_v38  ;;  %v265_v41 = vpop.permute.xlu1 %264 }
  0x99   : > { %v267_v42 = vmax.f32 %v263_v39, %v265_v41  ;;  %v246_v43 = vpop.permute.xlu0 %245 }
  0x9a   : > { %v248_v44 = vmax.f32 %v244_v40, %v246_v43 }
  0x9b   : > { %382 = vst.msk [vmem:[%s174_s19 + $0x20] sm:$0x1f] %vm192_vm0, %v267_v42 }
  0x9c   : > { %378 = vst.msk [vmem:[%s174_s19 + $0x18] sm:$0x1f] %vm192_vm0, %v248_v44 }
  0x9d PF: > { %s11_s8 = sadd.s32 1, %s435_s8   ;;  %s493_s6 = smov %s431_s7 }
  0x9e   : > { %p8_p5 = scmp.ge.s32.totalorder %s11_s8, 4   ;;  %s494_s7 = smov %s496_s9 }
  0xa0   :  { %10 = sbr.rel (!%p8_p5) target bundleno = 2 (0x2), region = 72 }

</bundles_post_ra>
